<compile_context>
chip_gen: v6e
topology: v6e:2x2x1
jax: 0.10.0
libtpu: 0.0.40
codegen_flags: <defaults>
</compile_context>

<pallas_src>
from functools import partial

import jax
import jax.numpy as jnp
from jax.experimental import pallas as pl
from jax.experimental.pallas import tpu as pltpu


def resblock_kernel(x_ref, w1_ref, w2_ref, b1_ref, b2_ref, out_ref, *, img_h):
    """Fused ResBlock forward for one block of Nb stacked batch images.

    x_ref     : (Nb*H, W*C)  f32   flattened NHWC input block
    w1/w2_ref : (W*C, 3*W*C) bf16  banded conv weights (dw taps + W zero-padding
                                   folded into the band; BN scale folded into
                                   output columns; dh taps concat on lanes)
    b1/b2_ref : (1, W*C)     f32   folded BN bias, tiled across W
    out_ref   : (Nb*H, W*C)  f32
    """
    m, wc = x_ref.shape
    x = x_ref[...]                                        # (Nb*H, WC), f32, in VMEM

    # Boundary-row masks for the dh halo, computed once and reused by both
    # convs.  Row r = b*H + h; rows with h == 0 have no h-1 neighbour, rows
    # with h == H-1 have no h+1 neighbour (zero "SAME" padding), and the mask
    # also stops the roll from leaking across stacked batch images.
    row = jax.lax.broadcasted_iota(jnp.int32, (m, wc), 0)
    row_in_img = row % img_h
    mask_up = row_in_img != 0
    mask_dn = row_in_img != (img_h - 1)

    def conv3x3_flat(act_f32, w_ref):
        # One bf16 MXU matmul yields the three dh-tap partials side by side in
        # the lane dim; the dh halo is applied with sublane rolls + row masks
        # (XLU/VPU), not extra matmuls.
        p = jnp.dot(act_f32.astype(jnp.bfloat16), w_ref[...],
                    preferred_element_type=jnp.float32)   # (M, 3*WC) f32
        p_top = p[:, :wc]              # tap dh=0 (belongs to output row h+1)
        p_mid = p[:, wc:2 * wc]        # tap dh=1 (row h)
        p_bot = p[:, 2 * wc:]          # tap dh=2 (belongs to output row h-1)
        up = jnp.where(mask_up, pltpu.roll(p_top, shift=1, axis=0), 0.0)
        dn = jnp.where(mask_dn, pltpu.roll(p_bot, shift=m - 1, axis=0), 0.0)
        return p_mid + up + dn

    # conv1 (BN1 scale folded into w1) -> +bias -> ReLU.
    h1 = jnp.maximum(conv3x3_flat(x, w1_ref) + b1_ref[...], 0.0)
    # conv2 (BN2 scale folded into w2) -> +bias -> +residual -> ReLU.
    h2 = conv3x3_flat(h1, w2_ref) + b2_ref[...]
    out_ref[...] = jnp.maximum(h2 + x, 0.0).astype(out_ref.dtype)


def _banded_conv_weights(w_hwio, W, out_scale):
    """(3,3,C,C) HWIO -> (W*C, 3*W*C) bf16, BN output-channel scale folded in.

    For each dh, build the (W*C, W*C) banded matrix that performs the 3-tap
    conv along W (including the zero padding at the W borders) on a flattened
    (W*C,) row; concatenate the three dh matrices along the output-lane dim.
    """
    w = w_hwio.astype(jnp.float32) * out_scale.astype(jnp.float32)[None, None, None, :]
    C = w.shape[-1]
    mats = []
    for dh in range(3):
        m = jnp.zeros((W * C, W * C), jnp.float32)
        for dw in range(3):
            band = jnp.eye(W, k=1 - dw, dtype=jnp.float32)
            m = m + jnp.kron(band, w[dh, dw])
        mats.append(m)
    return jnp.concatenate(mats, axis=1).astype(jnp.bfloat16)


def _tile_channel(v, W):
    """(C,) per-channel vector -> (1, W*C) matching lane index w*C + c."""
    C = v.shape[0]
    return jnp.tile(v.astype(jnp.float32).reshape(1, C), (1, W))


def _pick_batch_tile(n, h, target_rows=256, min_steps=2):
    """Largest Nb dividing n with Nb*h <= target_rows (fill v6e/v7x 256-row MXU),
    keeping >= min_steps grid steps (two v7x TensorCores) when the batch allows."""
    best = 1
    for nb in range(1, n + 1):
        if n % nb:
            continue
        if nb * h > target_rows:
            break
        if n < min_steps or n // nb >= min_steps:
            best = nb
    return best


@jax.jit
def resblock_forward_nhwc(x_nhwc, w1_hwio, w2_hwio, s1, b1, s2, b2):
    """Transpose-free entry: NHWC in, NHWC out (preferred across a network)."""
    N, H, W, C = x_nhwc.shape
    WC = W * C
    x_flat = x_nhwc.astype(jnp.float32).reshape(N * H, WC)   # lane-dense last dim

    w1cat = _banded_conv_weights(w1_hwio, W, s1)   # (WC, 3*WC) bf16, BN1 scale folded
    w2cat = _banded_conv_weights(w2_hwio, W, s2)   # (WC, 3*WC) bf16, BN2 scale folded
    b1t = _tile_channel(b1, W)                     # (1, WC) f32
    b2t = _tile_channel(b2, W)                     # (1, WC) f32

    nb = _pick_batch_tile(N, H)
    m_blk = nb * H
    grid = (N // nb,)

    # VMEM budget derived from actual buffer sizes (with headroom), clamped
    # well under v7x's 64 MiB physical VMEM.
    x_blk_bytes = m_blk * WC * 4
    w_bytes_each = WC * 3 * WC * 2                 # bf16
    bias_bytes = 2 * WC * 4
    pipeline_bytes = 2 * (2 * x_blk_bytes + 2 * w_bytes_each + bias_bytes)
    scratch_bytes = 16 * x_blk_bytes               # in-kernel f32/bf16 temporaries
    vmem_limit = int(min(max(pipeline_bytes + scratch_bytes, 4 * 2**20), 48 * 2**20))

    flops = 2 * 2 * (N * H) * WC * (3 * WC)        # two banded bf16 matmuls
    flops += 12 * N * H * WC                       # rolls/masks/bias/ReLU/residual
    bytes_accessed = (4 * 2 * N * H * WC           # x + out (f32)
                      + 2 * w_bytes_each           # conv weights (bf16)
                      + 2 * bias_bytes)

    out_flat = pl.pallas_call(
        partial(resblock_kernel, img_h=H),
        out_shape=jax.ShapeDtypeStruct((N * H, WC), jnp.float32),
        grid=grid,
        in_specs=[
            pl.BlockSpec((m_blk, WC), lambda n: (n, 0)),          # x block
            pl.BlockSpec((WC, 3 * WC), lambda n: (0, 0)),         # w1cat (resident)
            pl.BlockSpec((WC, 3 * WC), lambda n: (0, 0)),         # w2cat (resident)
            pl.BlockSpec((1, WC), lambda n: (0, 0)),              # bias1
            pl.BlockSpec((1, WC), lambda n: (0, 0)),              # bias2
        ],
        out_specs=pl.BlockSpec((m_blk, WC), lambda n: (n, 0)),
        compiler_params=pltpu.CompilerParams(
            dimension_semantics=("parallel",),
            vmem_limit_bytes=vmem_limit),
        cost_estimate=pl.CostEstimate(
            flops=flops, transcendentals=0, bytes_accessed=bytes_accessed),
    )(x_flat, w1cat, w2cat, b1t, b2t)

    return out_flat.reshape(N, H, W, C)


@jax.jit
def resblock_forward(x_nchw, w1_hwio, w2_hwio, s1, b1, s2, b2):
    """NCHW compatibility shim (matches the PyTorch module's layout).

    Prefer resblock_forward_nhwc end-to-end: each NCHW<->NHWC transpose here is
    a separate XLA HBM read+write pass over the whole activation.
    """
    x = jnp.transpose(x_nchw, (0, 2, 3, 1))
    y = resblock_forward_nhwc(x, w1_hwio, w2_hwio, s1, b1, s2, b2)
    return jnp.transpose(y, (0, 3, 1, 2))


def ref_forward(x_nchw, w1_hwio, w2_hwio, s1, b1, s2, b2):
    """Pure-JAX f32 reference (lax conv) for correctness check."""
    x = jnp.transpose(x_nchw, (0, 2, 3, 1)).astype(jnp.float32)
    dn = jax.lax.conv_dimension_numbers(x.shape, w1_hwio.shape,
                                        ("NHWC", "HWIO", "NHWC"))
    h = jax.lax.conv_general_dilated(x, w1_hwio, (1, 1), "SAME",
                                     dimension_numbers=dn)
    h = jnp.maximum(h * s1 + b1, 0.0)
    h2 = jax.lax.conv_general_dilated(h, w2_hwio, (1, 1), "SAME",
                                      dimension_numbers=dn)
    h2 = h2 * s2 + b2
    out = jnp.maximum(h2 + x, 0.0)
    return jnp.transpose(out, (0, 3, 1, 2))


if __name__ == "__main__":
    # nfilters = C = 8, N = 4, 16x16 spatial => lane dim W*C = 128,
    # batch tile Nb = 2 => grid of 2 steps, MXU M dim = 32.
    N, C, H, W = 4, 8, 16, 16
    key = jax.random.PRNGKey(0)
    kx, kw1, kw2, kg1, kb1, km1, kv1, kg2, kb2, km2, kv2 = jax.random.split(key, 11)

    x = jax.random.normal(kx, (N, C, H, W), jnp.float32)

    # Conv weights (HWIO), deterministic init.
    fan_in = C * 3 * 3
    w1 = jax.random.normal(kw1, (3, 3, C, C), jnp.float32) / jnp.sqrt(fan_in)
    w2 = jax.random.normal(kw2, (3, 3, C, C), jnp.float32) / jnp.sqrt(fan_in)

    # BatchNorm parameters + running stats, folded to per-channel scale/bias
    # (inference mode).
    eps = 1e-5
    g1 = 1.0 + 0.1 * jax.random.normal(kg1, (C,), jnp.float32)
    be1 = 0.1 * jax.random.normal(kb1, (C,), jnp.float32)
    m1 = 0.1 * jax.random.normal(km1, (C,), jnp.float32)
    v1 = 0.5 + jnp.abs(jax.random.normal(kv1, (C,), jnp.float32))
    g2 = 1.0 + 0.1 * jax.random.normal(kg2, (C,), jnp.float32)
    be2 = 0.1 * jax.random.normal(kb2, (C,), jnp.float32)
    m2 = 0.1 * jax.random.normal(km2, (C,), jnp.float32)
    v2 = 0.5 + jnp.abs(jax.random.normal(kv2, (C,), jnp.float32))

    s1 = g1 / jnp.sqrt(v1 + eps)
    bb1 = be1 - m1 * s1
    s2 = g2 / jnp.sqrt(v2 + eps)
    bb2 = be2 - m2 * s2

    out = jax.block_until_ready(resblock_forward(x, w1, w2, s1, bb1, s2, bb2))
    ref = jax.block_until_ready(ref_forward(x, w1, w2, s1, bb1, s2, bb2))

    assert out.shape == (N, C, H, W)
    # bf16 MXU inputs vs f32 reference -> relaxed tolerance.
    max_err = float(jnp.max(jnp.abs(out - ref)))
    assert jnp.allclose(out, ref, atol=5e-2, rtol=5e-2), max_err

    print("KERNEL_OK")
</pallas_src>

<mosaic_0001>
module attributes {stable_mosaic.version = 11 : i64} {
  func.func @resblock_kernel(%arg0: i32, %arg1: memref<32x128xf32, #tpu.memory_space<vmem>>, %arg2: memref<128x384xbf16, #tpu.memory_space<vmem>>, %arg3: memref<128x384xbf16, #tpu.memory_space<vmem>>, %arg4: memref<1x128xf32, #tpu.memory_space<vmem>>, %arg5: memref<1x128xf32, #tpu.memory_space<vmem>>, %arg6: memref<32x128xf32, #tpu.memory_space<vmem>>) attributes {dimension_semantics = [#tpu.dimension_semantics<parallel>], iteration_bounds = array<i64: 2>, scalar_prefetch = 0 : i64, scratch_operands = 0 : i64, tpu.core_type = #tpu.core_type<tc>, window_params = [{transform_indices = @transform_0, window_bounds = array<i64: 32, 128>}, {pipeline_mode = #tpu.pipeline_mode<synchronous>, transform_indices = @transform_1, window_bounds = array<i64: 128, 384>}, {pipeline_mode = #tpu.pipeline_mode<synchronous>, transform_indices = @transform_2, window_bounds = array<i64: 128, 384>}, {pipeline_mode = #tpu.pipeline_mode<synchronous>, transform_indices = @transform_3, window_bounds = array<i64: 1, 128>}, {pipeline_mode = #tpu.pipeline_mode<synchronous>, transform_indices = @transform_4, window_bounds = array<i64: 1, 128>}, {transform_indices = @transform_5, window_bounds = array<i64: 32, 128>}]} {
    %c0 = arith.constant 0 : index
    %c0_0 = arith.constant 0 : index
    %0 = vector.load %arg1[%c0, %c0_0] : memref<32x128xf32, #tpu.memory_space<vmem>>, vector<32x128xf32>
    %1 = tpu.iota {dimensions = array<i32: 0>} : vector<32x128xi32>
    %c16_i32 = arith.constant 16 : i32
    %c0_i32 = arith.constant 0 : i32
    %2 = arith.cmpi eq, %c16_i32, %c0_i32 : i32
    %c1_i32 = arith.constant 1 : i32
    %3 = arith.select %2, %c1_i32, %c16_i32 : i32
    %4 = vector.broadcast %3 : i32 to vector<32x128xi32>
    %5 = arith.remsi %1, %4 : vector<32x128xi32>
    %c0_i32_1 = arith.constant 0 : i32
    %6 = vector.broadcast %c0_i32_1 : i32 to vector<32x128xi32>
    %7 = arith.cmpi ne, %5, %6 : vector<32x128xi32>
    %c0_i32_2 = arith.constant 0 : i32
    %8 = vector.broadcast %c0_i32_2 : i32 to vector<32x128xi32>
    %9 = arith.cmpi slt, %5, %8 : vector<32x128xi32>
    %c0_i32_3 = arith.constant 0 : i32
    %10 = arith.cmpi slt, %3, %c0_i32_3 : i32
    %11 = vector.broadcast %10 : i1 to vector<32x128xi1>
    %12 = vector.broadcast %11 : vector<32x128xi1> to vector<32x128xi1>
    %13 = arith.xori %9, %12 : vector<32x128xi1>
    %14 = arith.andi %13, %7 : vector<32x128xi1>
    %15 = vector.broadcast %3 : i32 to vector<32x128xi32>
    %16 = arith.addi %5, %15 : vector<32x128xi32>
    %17 = arith.select %14, %16, %5 : vector<32x128xi1>, vector<32x128xi32>
    %c0_i32_4 = arith.constant 0 : i32
    %18 = vector.broadcast %c0_i32_4 : i32 to vector<32x128xi32>
    %19 = arith.cmpi ne, %17, %18 : vector<32x128xi32>
    %c15_i32 = arith.constant 15 : i32
    %20 = vector.broadcast %c15_i32 : i32 to vector<32x128xi32>
    %21 = arith.cmpi ne, %17, %20 : vector<32x128xi32>
    %22 = arith.truncf %0 : vector<32x128xf32> to vector<32x128xbf16>
    %c0_5 = arith.constant 0 : index
    %c0_6 = arith.constant 0 : index
    %23 = vector.load %arg2[%c0_5, %c0_6] : memref<128x384xbf16, #tpu.memory_space<vmem>>, vector<128x384xbf16>
    %cst = arith.constant dense<0.000000e+00> : vector<32x384xf32>
    %24 = tpu.matmul %22, %23, %cst {dimension_numbers = #tpu.dot_dimension_numbers<[1], [0], [0], [1], [0, 0, 1, 1], [], []>} : vector<32x128xbf16>, vector<128x384xbf16>, vector<32x384xf32> -> vector<32x384xf32>
    %25 = vector.extract_strided_slice %24 {offsets = [0, 0], sizes = [32, 128], strides = [1, 1]} : vector<32x384xf32> to vector<32x128xf32>
    %26 = vector.extract_strided_slice %24 {offsets = [0, 128], sizes = [32, 128], strides = [1, 1]} : vector<32x384xf32> to vector<32x128xf32>
    %27 = vector.extract_strided_slice %24 {offsets = [0, 256], sizes = [32, 128], strides = [1, 1]} : vector<32x384xf32> to vector<32x128xf32>
    %c1_i32_7 = arith.constant 1 : i32
    %28 = tpu.dynamic_rotate %25 by %c1_i32_7 dim 0 : vector<32x128xf32>, i32 -> vector<32x128xf32>
    %cst_8 = arith.constant 0.000000e+00 : f32
    %29 = vector.broadcast %cst_8 : f32 to vector<32x128xf32>
    %30 = arith.select %19, %28, %29 : vector<32x128xi1>, vector<32x128xf32>
    %c31_i32 = arith.constant 31 : i32
    %31 = tpu.dynamic_rotate %27 by %c31_i32 dim 0 : vector<32x128xf32>, i32 -> vector<32x128xf32>
    %cst_9 = arith.constant 0.000000e+00 : f32
    %32 = vector.broadcast %cst_9 : f32 to vector<32x128xf32>
    %33 = arith.select %21, %31, %32 : vector<32x128xi1>, vector<32x128xf32>
    %34 = arith.addf %26, %30 : vector<32x128xf32>
    %35 = arith.addf %34, %33 : vector<32x128xf32>
    %c0_10 = arith.constant 0 : index
    %c0_11 = arith.constant 0 : index
    %36 = vector.load %arg4[%c0_10, %c0_11] : memref<1x128xf32, #tpu.memory_space<vmem>>, vector<1x128xf32>
    %37 = vector.broadcast %36 : vector<1x128xf32> to vector<32x128xf32>
    %38 = arith.addf %35, %37 : vector<32x128xf32>
    %cst_12 = arith.constant 0.000000e+00 : f32
    %39 = vector.broadcast %cst_12 : f32 to vector<32x128xf32>
    %40 = arith.maximumf %38, %39 : vector<32x128xf32>
    %41 = arith.truncf %40 : vector<32x128xf32> to vector<32x128xbf16>
    %c0_13 = arith.constant 0 : index
    %c0_14 = arith.constant 0 : index
    %42 = vector.load %arg3[%c0_13, %c0_14] : memref<128x384xbf16, #tpu.memory_space<vmem>>, vector<128x384xbf16>
    %cst_15 = arith.constant dense<0.000000e+00> : vector<32x384xf32>
    %43 = tpu.matmul %41, %42, %cst_15 {dimension_numbers = #tpu.dot_dimension_numbers<[1], [0], [0], [1], [0, 0, 1, 1], [], []>} : vector<32x128xbf16>, vector<128x384xbf16>, vector<32x384xf32> -> vector<32x384xf32>
    %44 = vector.extract_strided_slice %43 {offsets = [0, 0], sizes = [32, 128], strides = [1, 1]} : vector<32x384xf32> to vector<32x128xf32>
    %45 = vector.extract_strided_slice %43 {offsets = [0, 128], sizes = [32, 128], strides = [1, 1]} : vector<32x384xf32> to vector<32x128xf32>
    %46 = vector.extract_strided_slice %43 {offsets = [0, 256], sizes = [32, 128], strides = [1, 1]} : vector<32x384xf32> to vector<32x128xf32>
    %c1_i32_16 = arith.constant 1 : i32
    %47 = tpu.dynamic_rotate %44 by %c1_i32_16 dim 0 : vector<32x128xf32>, i32 -> vector<32x128xf32>
    %cst_17 = arith.constant 0.000000e+00 : f32
    %48 = vector.broadcast %cst_17 : f32 to vector<32x128xf32>
    %49 = arith.select %19, %47, %48 : vector<32x128xi1>, vector<32x128xf32>
    %c31_i32_18 = arith.constant 31 : i32
    %50 = tpu.dynamic_rotate %46 by %c31_i32_18 dim 0 : vector<32x128xf32>, i32 -> vector<32x128xf32>
    %cst_19 = arith.constant 0.000000e+00 : f32
    %51 = vector.broadcast %cst_19 : f32 to vector<32x128xf32>
    %52 = arith.select %21, %50, %51 : vector<32x128xi1>, vector<32x128xf32>
    %53 = arith.addf %45, %49 : vector<32x128xf32>
    %54 = arith.addf %53, %52 : vector<32x128xf32>
    %c0_20 = arith.constant 0 : index
    %c0_21 = arith.constant 0 : index
    %55 = vector.load %arg5[%c0_20, %c0_21] : memref<1x128xf32, #tpu.memory_space<vmem>>, vector<1x128xf32>
    %56 = vector.broadcast %55 : vector<1x128xf32> to vector<32x128xf32>
    %57 = arith.addf %54, %56 : vector<32x128xf32>
    %58 = arith.addf %57, %0 : vector<32x128xf32>
    %cst_22 = arith.constant 0.000000e+00 : f32
    %59 = vector.broadcast %cst_22 : f32 to vector<32x128xf32>
    %60 = arith.maximumf %58, %59 : vector<32x128xf32>
    %c0_23 = arith.constant 0 : index
    %c0_24 = arith.constant 0 : index
    %61 = vector.load %arg6[%c0_23, %c0_24] : memref<32x128xf32, #tpu.memory_space<vmem>>, vector<32x128xf32>
    tpu.vector_store %arg6[%c0_23, %c0_24], %60 {strides = array<i32>} : memref<32x128xf32, #tpu.memory_space<vmem>>, vector<32x128xf32>,
    return
  }
  func.func @transform_0(%arg0: i32) -> (i32, i32) {
    %c0_i32 = arith.constant 0 : i32
    %c0_i32_0 = arith.constant 0 : i32
    return %arg0, %c0_i32 : i32, i32
  }
  func.func @transform_1(%arg0: i32) -> (i32, i32) {
    %c0_i32 = arith.constant 0 : i32
    %c0_i32_0 = arith.constant 0 : i32
    %c0_i32_1 = arith.constant 0 : i32
    return %c0_i32, %c0_i32_0 : i32, i32
  }
  func.func @transform_2(%arg0: i32) -> (i32, i32) {
    %c0_i32 = arith.constant 0 : i32
    %c0_i32_0 = arith.constant 0 : i32
    %c0_i32_1 = arith.constant 0 : i32
    return %c0_i32, %c0_i32_0 : i32, i32
  }
  func.func @transform_3(%arg0: i32) -> (i32, i32) {
    %c0_i32 = arith.constant 0 : i32
    %c0_i32_0 = arith.constant 0 : i32
    %c0_i32_1 = arith.constant 0 : i32
    return %c0_i32, %c0_i32_0 : i32, i32
  }
  func.func @transform_4(%arg0: i32) -> (i32, i32) {
    %c0_i32 = arith.constant 0 : i32
    %c0_i32_0 = arith.constant 0 : i32
    %c0_i32_1 = arith.constant 0 : i32
    return %c0_i32, %c0_i32_0 : i32, i32
  }
  func.func @transform_5(%arg0: i32) -> (i32, i32) {
    %c0_i32 = arith.constant 0 : i32
    %c0_i32_0 = arith.constant 0 : i32
    return %arg0, %c0_i32 : i32, i32
  }
}

</mosaic_0001>

<bundles_post_ra>
// kernel: resblock_forward_nhwc.1
= control target key start
LH: loop header
LB: loop body
LE: loop exit
PB: predicated region body
PF: predicated region fallthrough
CT: control target
= control target key end

     0   :  { %s1215_s18 = smov 0   ;;  %s1481_s0 = inlined_call_operand.vmem [shape: f32[64,128], index: 0, kind: input, shape index: {}]   ;;  %s1482_s1 = inlined_call_operand.vmem [shape: bf16[128,384], index: 1, kind: input, shape index: {}]   ;;  %s1483_s2 = inlined_call_operand.vmem [shape: bf16[128,384], index: 2, kind: input, shape index: {}]   ;;  %s1484_s3 = inlined_call_operand.vmem [shape: f32[1,128], index: 3, kind: input, shape index: {}]   ;;  %s1485_s4 = inlined_call_operand.vmem [shape: f32[1,128], index: 4, kind: input, shape index: {}]   ;;  %s1486_s5 = inlined_call_operand.vmem [shape: f32[64,128], index: 5, kind: output, shape index: {}]  }
   0x1 LB: > { %s982_s19 = sadd.s32 4294967295, %s1182_s18   ;;  %p986_p0 = scmp.ge.s32.totalorder %s1182_s18, 1  ;;  %s1182_s18 = sphi %s1215_s18, %s15_s18  }
   0x2   : > { %p188_p1 = scmp.lt.s32.totalorder %s1182_s18, 3 }
   0x4   : > { %p189_p2 = pnand %p986_p0, %p188_p1 }
   0x5   : > { %s987_s22 = sshll.u32 (!%p189_p2), %s982_s19, 2 }
   0x6   : > { %192 = sbr.rel (%p189_p2) target bundleno = 483 (0x1e3), region = 40  ;;  %p217_p3 = scmp.lt.s32.totalorder (!%p189_p2), %s987_s22, 7 }
   0xb   : > { %v1112_v0 = vld [vmem:[%s1482_s1 + $0xac] ss:$12 sps:$4 sm:$0xff]   ;;  %v1114_v1 = vld [vmem:[%s1482_s1 + $0xb0] ss:$12 sps:$4 sm:$0xff]   ;;  %v1184_v2 = vmov 0   ;;  %s1496_s22 = smov (!%p217_p3, %s987_s22), 7  ;;  %v233_v55 = vlaneseq }
   0xc   : > { %488 = vmatprep.mubr.bf16.mxu0 %v1184_v2  ;;  %456 = vmatprep.subr.bf16.mxu0 %v1112_v0  ;;  %v1115_v3 = vld [vmem:[%s1482_s1 + $0xa8] ss:$12 sps:$4 sm:$0xff]   ;;  %v1118_v5 = vld [vmem:[%s1482_s1 + $0x98] ss:$12 sps:$4 sm:$0xff]   ;;  %v1119_v6 = vld [vmem:[%s1482_s1 + $0x90] ss:$12 sps:$4 sm:$0xff]  }
   0xd   : > { %1063 = vmatprep.subr.bf16.mxu1 %v1114_v1  ;;  %v1116_v4 = vld [vmem:[%s1482_s1 + $0x94] ss:$12 sps:$4 sm:$0xff]   ;;  %457 = vmatpush1.bf16.msra.mxu0 %v1115_v3  ;;  %v1120_v7 = vld [vmem:[%s1482_s1 + $0x7c] ss:$12 sps:$4 sm:$0xff]   ;;  %v1123_v9 = vld [vmem:[%s1482_s1 + $0x78] ss:$12 sps:$4 sm:$0xff]  }
   0xe   : > { %1064 = vmatpush3.bf16.msra.mxu1 %v1114_v1  ;;  %458 = vmatprep.subr.bf16.mxu0 %v1116_v4  ;;  %v1122_v8 = vld [vmem:[%s1482_s1 + $0x80] ss:$12 sps:$4 sm:$0xff]   ;;  %v1124_v10 = vld [vmem:[%s1482_s1 + $0x64] ss:$12 sps:$4 sm:$0xff]   ;;  %v1126_v11 = vld [vmem:[%s1482_s1 + $0x68] ss:$12 sps:$4 sm:$0xff]  }
   0xf   : > { %1065 = vmatprep.subr.bf16.mxu1 %v1118_v5  ;;  %v1127_v12 = vld [vmem:[%s1482_s1 + $0x60] ss:$12 sps:$4 sm:$0xff]   ;;  %s988_s21 = sshll.u32 %s1496_s22, 3  ;;  %v1130_v14 = vld [vmem:[%s1482_s1 + $0x50] ss:$12 sps:$4 sm:$0xff]   ;;  %v1390_v56 = vshrl.u32 %v233_v55, 7 }
  0x10   : > { %v1128_v13 = vld [vmem:[%s1482_s1 + $0x4c] ss:$12 sps:$4 sm:$0xff]   ;;  %v1131_v15 = vld [vmem:[%s1482_s1 + $0x48] ss:$12 sps:$4 sm:$0xff]   ;;  %s220_s6 = scalar_lea.vmem %s1481_s0, %s988_s21  ;;  %v1135_v19 = vld [vmem:[%s1482_s1 + $0x30] ss:$12 sps:$4 sm:$0xff]   ;;  %s226_s13 = scalar_lea.vmem %s1486_s5, %s988_s21 }
  0x11   : > { %459 = vmatpush1.bf16.msra.mxu0 %v1119_v6  ;;  %v1132_v16 = vld [vmem:[%s1482_s1 + $0x34] ss:$12 sps:$4 sm:$0xff]   ;;  %v1134_v17 = vld [vmem:[%s1482_s1 + $0x38] ss:$12 sps:$4 sm:$0xff]   ;;  %v1288_v20 = vld [vmem:[%s220_s6 + $0x8] sm:$0xff]  ;;  %v235_v59 = vadd.s32 8, %v1390_v56 }
  0x12   : > { %1066 = vmatpush3.bf16.msra.mxu1 %v1118_v5  ;;  %460 = vmatprep.subr.bf16.mxu0 %v1120_v7  ;;  %v1283_v18 = vld [vmem:[%s220_s6] sm:$0xff]  ;;  %v1136_v21 = vld [vmem:[%s1482_s1 + $0x1c] ss:$12 sps:$4 sm:$0xff]   ;;  %v1310_v28 = vld [vmem:[%s220_s6 + $0x10] sm:$0xff]  ;;  %v236_v60 = vadd.s32 16, %v1390_v56  ;;  %vm562_vm0 = vcmp.lt.s32.totalorder %v1390_v56, 1 }
  0x13   : > { %1067 = vmatprep.subr.bf16.mxu1 %v1122_v8  ;;  %v294_v22 = vpack.c.bf16 %v1288_v20, %v1283_v18  ;;  %v1138_v23 = vld [vmem:[%s1482_s1 + $0x20] ss:$12 sps:$4 sm:$0xff]   ;;  %v1139_v24 = vld [vmem:[%s1482_s1 + $0x18] ss:$12 sps:$4 sm:$0xff]   ;;  %v1142_v26 = vld [vmem:[%s1482_s1 + $0x8] ss:$12 sps:$4 sm:$0xff]  }
  0x14   : > { %v1140_v25 = vld [vmem:[%s1482_s1 + $0x4] ss:$12 sps:$4 sm:$0xff]   ;;  %v1143_v27 = vld [vmem:[%s1482_s1] ss:$12 sps:$4 sm:$0xff]   ;;  %v1312_v29 = vld [vmem:[%s220_s6 + $0x18] sm:$0xff]  ;;  %v249_v1 = vand.u32 15, %v235_v59 }
  0x15   : > { %461 = vmatpush1.bf16.msra.mxu0 %v1123_v9  ;;  %1079 = vmatprep.mubr.bf16.mxu1 %v294_v22  ;;  %v1146_v30 = vld [vmem:[%s1483_s2 + $0xac] ss:$12 sps:$4 sm:$0xff]   ;;  %v1147_v31 = vld [vmem:[%s1483_s2 + $0xb0] ss:$12 sps:$4 sm:$0xff]   ;;  %v295_v32 = vpack.c.bf16 %v1312_v29, %v1310_v28  ;;  %v1144_v33 = vld [vmem:[%s1483_s2 + $0xa8] ss:$12 sps:$4 sm:$0xff]  }
  0x16   : > { %1068 = vmatpush3.bf16.msra.mxu1 %v1122_v8  ;;  %462 = vmatprep.subr.bf16.mxu0 %v1124_v10  ;;  %v1150_v34 = vld [vmem:[%s1483_s2 + $0x94] ss:$12 sps:$4 sm:$0xff]   ;;  %v1148_v35 = vld [vmem:[%s1483_s2 + $0x90] ss:$12 sps:$4 sm:$0xff]   ;;  %v1151_v36 = vld [vmem:[%s1483_s2 + $0x98] ss:$12 sps:$4 sm:$0xff]  }
  0x17   : > { %1069 = vmatprep.subr.bf16.mxu1 %v1126_v11  ;;  %v1154_v37 = vld [vmem:[%s1483_s2 + $0x7c] ss:$12 sps:$4 sm:$0xff]   ;;  %v1152_v38 = vld [vmem:[%s1483_s2 + $0x78] ss:$12 sps:$4 sm:$0xff]   ;;  %v1155_v39 = vld [vmem:[%s1483_s2 + $0x80] ss:$12 sps:$4 sm:$0xff]  }
  0x18   : > { %v1158_v40 = vld [vmem:[%s1483_s2 + $0x64] ss:$12 sps:$4 sm:$0xff]   ;;  %v1156_v41 = vld [vmem:[%s1483_s2 + $0x60] ss:$12 sps:$4 sm:$0xff]   ;;  %v1159_v42 = vld [vmem:[%s1483_s2 + $0x68] ss:$12 sps:$4 sm:$0xff]  }
  0x19   : > { %463 = vmatpush1.bf16.msra.mxu0 %v1127_v12  ;;  %v1162_v43 = vld [vmem:[%s1483_s2 + $0x4c] ss:$12 sps:$4 sm:$0xff]   ;;  %v1160_v44 = vld [vmem:[%s1483_s2 + $0x48] ss:$12 sps:$4 sm:$0xff]   ;;  %v1163_v45 = vld [vmem:[%s1483_s2 + $0x50] ss:$12 sps:$4 sm:$0xff]  }
  0x1a   : > { %1070 = vmatpush3.bf16.msra.mxu1 %v1126_v11  ;;  %464 = vmatprep.subr.bf16.mxu0 %v1128_v13  ;;  %v1166_v46 = vld [vmem:[%s1483_s2 + $0x34] ss:$12 sps:$4 sm:$0xff]   ;;  %v1164_v47 = vld [vmem:[%s1483_s2 + $0x30] ss:$12 sps:$4 sm:$0xff]   ;;  %v1167_v48 = vld [vmem:[%s1483_s2 + $0x38] ss:$12 sps:$4 sm:$0xff]  }
  0x1b   : > { %1071 = vmatprep.subr.bf16.mxu1 %v1130_v14  ;;  %v1170_v49 = vld [vmem:[%s1483_s2 + $0x1c] ss:$12 sps:$4 sm:$0xff]   ;;  %v1168_v50 = vld [vmem:[%s1483_s2 + $0x18] ss:$12 sps:$4 sm:$0xff]   ;;  %v1171_v51 = vld [vmem:[%s1483_s2 + $0x20] ss:$12 sps:$4 sm:$0xff]  }
  0x1c   : > { %v1174_v52 = vld [vmem:[%s1483_s2 + $0x4] ss:$12 sps:$4 sm:$0xff]   ;;  %v1172_v53 = vld [vmem:[%s1483_s2] ss:$12 sps:$4 sm:$0xff]   ;;  %v1175_v54 = vld [vmem:[%s1483_s2 + $0x8] ss:$12 sps:$4 sm:$0xff]  }
  0x1d   : > { %465 = vmatpush1.bf16.msra.mxu0 %v1131_v15  ;;  %v256_v5 = vand.u32 15, %v236_v60  ;;  %vm575_vm1 = vcmp.lt.s32.totalorder %v1390_v56, 7  ;;  %v237_v9 = vadd.s32 24, %v1390_v56  ;;  %vm1399_vm2 = vcmp.ne.s32.totalorder %v249_v1, 15 }
  0x1e   : > { %1072 = vmatpush3.bf16.msra.mxu1 %v1130_v14  ;;  %466 = vmatprep.subr.bf16.mxu0 %v1132_v16 }
  0x1f   : > { %1073 = vmatprep.subr.bf16.mxu1 %v1134_v17  ;;  %vm1405_vm3 = vcmp.ne.s32.totalorder %v256_v5, 0 }
  0x21   : > { %467 = vmatpush1.bf16.msra.mxu0 %v1135_v19 }
  0x22   : > { %1074 = vmatpush3.bf16.msra.mxu1 %v1134_v17  ;;  %468 = vmatprep.subr.bf16.mxu0 %v1136_v21  ;;  %v242_v17 = vand.u32 15, %v1390_v56 }
  0x23   : > { %1075 = vmatprep.subr.bf16.mxu1 %v1138_v23 }
  0x24   : > { %vm1416_vm4 = vcmp.ne.s32.totalorder %v242_v17, 0 }
  0x25   : > { %469 = vmatpush1.bf16.msra.mxu0 %v1139_v24 }
  0x26   : > { %1076 = vmatpush3.bf16.msra.mxu1 %v1138_v23  ;;  %470 = vmatprep.subr.bf16.mxu0 %v1140_v25  ;;  %v263_v23 = vand.u32 15, %v237_v9 }
  0x27   : > { %1077 = vmatprep.subr.bf16.mxu1 %v1142_v26 }
  0x28   : > { %vm1420_vm5 = vcmp.ne.s32.totalorder %v263_v23, 15 }
  0x29   : > { %471 = vmatpush1.bf16.msra.mxu0 %v1143_v27 }
  0x2a   : > { %1078 = vmatpush3.bf16.msra.mxu1 %v1142_v26  ;;  %769 = vmatprep.subr.bf16.mxu0 %v1146_v30 }
  0x2b   : > { %1083 = vmatprep.subr.bf16.mxu1 %v1147_v31 }
  0x2c   : > { %489 = vmatmul.mubr.bf16.vlgmr.msra.gmra.mxu0 %v294_v22 }
  0x2d   : > { %1080 = vmatmul.mubr.bf16.vlgmr.msra.gmra.mxu1 %v295_v32  ;;  %498 = vmatprep.mubr.bf16.mxu0 %v1184_v2 }
  0x2e   : > { %770 = vmatpush1.bf16.msra.mxu0 %v1144_v33  ;;  %1084 = vmatpush3.bf16.msra.mxu1 %v1147_v31 }
  0x2f   : > { %771 = vmatprep.subr.bf16.mxu0 %v1150_v34  ;;  %1085 = vmatprep.subr.bf16.mxu1 %v1151_v36 }
  0x32   : > { %772 = vmatpush1.bf16.msra.mxu0 %v1148_v35  ;;  %1086 = vmatpush3.bf16.msra.mxu1 %v1151_v36 }
  0x33   : > { %773 = vmatprep.subr.bf16.mxu0 %v1154_v37  ;;  %1087 = vmatprep.subr.bf16.mxu1 %v1155_v39 }
  0x34   : > { %499 = vmatmul.mubr.bf16.gmra.mxu0 %v295_v32 }
  0x35   : > { %801 = vmatprep.mubr.bf16.mxu0 %v1184_v2 }
  0x36   : > { %774 = vmatpush1.bf16.msra.mxu0 %v1152_v38  ;;  %1088 = vmatpush3.bf16.msra.mxu1 %v1155_v39 }
  0x37   : > { %775 = vmatprep.subr.bf16.mxu0 %v1158_v40  ;;  %1089 = vmatprep.subr.bf16.mxu1 %v1159_v42 }
  0x3a   : > { %776 = vmatpush1.bf16.msra.mxu0 %v1156_v41  ;;  %1090 = vmatpush3.bf16.msra.mxu1 %v1159_v42  ;;  %v1015_v42 = vld [vmem:[%s1484_s3] ss:$0 sm:$0xff] }
  0x3b   : > { %777 = vmatprep.subr.bf16.mxu0 %v1162_v43  ;;  %1091 = vmatprep.subr.bf16.mxu1 %v1163_v45 }
  0x3e   : > { %778 = vmatpush1.bf16.msra.mxu0 %v1160_v44  ;;  %1092 = vmatpush3.bf16.msra.mxu1 %v1163_v45 }
  0x3f   : > { %779 = vmatprep.subr.bf16.mxu0 %v1166_v46  ;;  %1093 = vmatprep.subr.bf16.mxu1 %v1167_v48 }
  0x42   : > { %780 = vmatpush1.bf16.msra.mxu0 %v1164_v47  ;;  %1094 = vmatpush3.bf16.msra.mxu1 %v1167_v48 }
  0x43   : > { %781 = vmatprep.subr.bf16.mxu0 %v1170_v49  ;;  %1095 = vmatprep.subr.bf16.mxu1 %v1171_v51 }
  0x46   : > { %782 = vmatpush1.bf16.msra.mxu0 %v1168_v50  ;;  %1096 = vmatpush3.bf16.msra.mxu1 %v1171_v51 }
  0x47   : > { %783 = vmatprep.subr.bf16.mxu0 %v1174_v52  ;;  %1097 = vmatprep.subr.bf16.mxu1 %v1175_v54 }
  0x4a   : > { %784 = vmatpush1.bf16.msra.mxu0 %v1172_v53  ;;  %1098 = vmatpush3.bf16.msra.mxu1 %v1175_v54 }
  0xec   : > { %v490_v57 = vpop.f32.mrf.mxu0 }
  0xed   : > { %v1081_v58 = vpop.f32.mrf.mxu1  ;;  %v558_v6 = vrot.slane %v490_v57, 7 }
  0xee   : > { %v492_v61 = vpop.f32.mrf.mxu0  ;;  %v573_v3 = vrot.slane %v1081_v58, 1 }
  0xef   : > { %v543_v62 = vpop.f32.mrf.mxu1 }
  0xf0   : > { %v494_v63 = vpop.f32.mrf.mxu0  ;;  %v571_v19 = vrot.slane %v543_v62, 1 }
  0xf1   : > { %v1082_v0 = vpop.f32.mrf.mxu1  ;;  %v559_v4 = vrot.slane %v494_v63, 7 }
  0xf2   : > { %v496_v7 = vpop.f32.mrf.mxu0  ;;  %v574_v21 = vrot.slane %v1082_v0, 1 }
  0xf3   : > { %v546_v8 = vpop.f32.mrf.mxu1  ;;  %v565_v11 = vsel %vm562_vm0, %v558_v6, %v559_v4 }
  0xf4   : > { %v572_v10 = vrot.slane %v546_v8, 1  ;;  %v500_v13 = vpop.f32.mrf.mxu0  ;;  %v585_v24 = vadd.f32 %v565_v11, %v496_v7  ;;  %v579_v36 = vsel %vm575_vm1, %v574_v21, %v571_v19  ;;  %v576_v38 = vsel %vm575_vm1, %v573_v3, %v574_v21 }
  0xf5   : > { %v560_v15 = vrot.slane %v500_v13, 7  ;;  %v583_v46 = vsel %vm1420_vm5, %v579_v36, 0.0 }
  0xf6   : > { %v577_v14 = vsel %vm575_vm1, %v572_v10, %v573_v3  ;;  %v502_v22 = vpop.f32.mrf.mxu0  ;;  %v578_v47 = vsel %vm575_vm1, %v571_v19, %v572_v10 }
  0xf7   : > { %v564_v25 = vsel %vm562_vm0, %v559_v4, %v560_v15  ;;  %v581_v26 = vsel %vm1399_vm2, %v577_v14, 0.0 }
  0xf8   : > { %v569_v27 = vsel %vm1405_vm3, %v564_v25, 0.0  ;;  %v504_v30 = vpop.f32.mrf.mxu0  ;;  %v589_v37 = vadd.f32 %v585_v24, %v581_v26 }
  0xf9   : > { %v586_v31 = vadd.f32 %v569_v27, %v502_v22  ;;  %v561_v33 = vrot.slane %v504_v30, 7 }
  0xfa   : > { %v506_v35 = vpop.f32.mrf.mxu0  ;;  %v600_v49 = vadd.f32 %v1015_v42, %v589_v37 }
  0xfb   : > { %v566_v39 = vsel %vm562_vm0, %v561_v33, %v558_v6  ;;  %v563_v40 = vsel %vm562_vm0, %v560_v15, %v561_v33  ;;  %v590_v41 = vadd.f32 %v586_v31, %v576_v38  ;;  %v1040_v33 = vld [vmem:[%s1485_s4] ss:$0 sm:$0xff] }
  0xfc   : > { %v567_v43 = vsel %vm1416_vm4, %v566_v39, 0.0  ;;  %v587_v44 = vadd.f32 %v563_v40, %v506_v35  ;;  %v604_v55 = vmax.f32 %v600_v49, 0.0 }
  0xfd   : > { %v584_v45 = vadd.f32 %v567_v43, %v492_v61  ;;  %v601_v51 = vadd.f32 %v1015_v42, %v590_v41 }
  0xfe   : > { %v591_v48 = vadd.f32 %v587_v44, %v583_v46 }
  0xff   : > { %v588_v50 = vadd.f32 %v584_v45, %v578_v47  ;;  %v605_v58 = vmax.f32 %v601_v51, 0.0 }
 0x100   : > { %v602_v52 = vadd.f32 %v1015_v42, %v591_v48 }
 0x101   : > { %v599_v53 = vadd.f32 %v1015_v42, %v588_v50 }
 0x102   : > { %v606_v54 = vmax.f32 %v602_v52, 0.0 }
 0x103   : > { %v603_v57 = vmax.f32 %v599_v53, 0.0 }
 0x104   : > { %v608_v60 = vpack.c.bf16 %v606_v54, %v605_v58 }
 0x105   : > { %v607_v59 = vpack.c.bf16 %v604_v55, %v603_v57 }
 0x107   : > { %802 = vmatmul.mubr.bf16.vlgmr.msra.gmra.mxu0 %v607_v59  ;;  %1099 = vmatprep.mubr.bf16.mxu1 %v607_v59 }
 0x108   : > { %1100 = vmatmul.mubr.bf16.vlgmr.msra.gmra.mxu1 %v608_v60  ;;  %811 = vmatprep.mubr.bf16.mxu0 %v1184_v2 }
 0x10f   : > { %812 = vmatmul.mubr.bf16.gmra.mxu0 %v608_v60 }
 0x1c7   : > { %v803_v61 = vpop.f32.mrf.mxu0 }
 0x1c8   : > { %v1101_v62 = vpop.f32.mrf.mxu1  ;;  %v871_v6 = vrot.slane %v803_v61, 7 }
 0x1c9   : > { %v805_v63 = vpop.f32.mrf.mxu0  ;;  %v885_v8 = vrot.slane %v1101_v62, 1 }
 0x1ca   : > { %v856_v0 = vpop.f32.mrf.mxu1 }
 0x1cb   : > { %v807_v1 = vpop.f32.mrf.mxu0  ;;  %v883_v21 = vrot.slane %v856_v0, 1 }
 0x1cc   : > { %v872_v3 = vrot.slane %v807_v1, 7  ;;  %v1102_v4 = vpop.f32.mrf.mxu1 }
 0x1cd   : > { %v809_v5 = vpop.f32.mrf.mxu0  ;;  %v886_v14 = vrot.slane %v1102_v4, 1 }
 0x1ce   : > { %v859_v7 = vpop.f32.mrf.mxu1  ;;  %v877_v11 = vsel %vm562_vm0, %v871_v6, %v872_v3 }
 0x1cf   : > { %v884_v9 = vrot.slane %v859_v7, 1  ;;  %v813_v10 = vpop.f32.mrf.mxu0  ;;  %v896_v22 = vadd.f32 %v877_v11, %v809_v5  ;;  %v887_v30 = vsel %vm575_vm1, %v885_v8, %v886_v14  ;;  %v890_v12 = vsel %vm575_vm1, %v886_v14, %v883_v21 }
 0x1d0   : > { %v873_v13 = vrot.slane %v813_v10, 7  ;;  %v894_v40 = vsel %vm1420_vm5, %v890_v12, 0.0 }
 0x1d1   : > { %v888_v2 = vsel %vm575_vm1, %v884_v9, %v885_v8  ;;  %v815_v15 = vpop.f32.mrf.mxu0  ;;  %v889_v41 = vsel %vm575_vm1, %v883_v21, %v884_v9 }
 0x1d2   : > { %v892_v17 = vsel %vm1399_vm2, %v888_v2, 0.0  ;;  %v876_v19 = vsel %vm562_vm0, %v872_v3, %v873_v13 }
 0x1d3   : > { %v881_v23 = vsel %vm1405_vm3, %v876_v19, 0.0  ;;  %v817_v24 = vpop.f32.mrf.mxu0  ;;  %v900_v27 = vadd.f32 %v896_v22, %v892_v17 }
 0x1d4   : > { %v897_v25 = vadd.f32 %v881_v23, %v815_v15  ;;  %v874_v26 = vrot.slane %v817_v24, 7 }
 0x1d5   : > { %v819_v31 = vpop.f32.mrf.mxu0  ;;  %v911_v42 = vadd.f32 %v1040_v33, %v900_v27 }
 0x1d6   : > { %v901_v35 = vadd.f32 %v897_v25, %v887_v30  ;;  %v878_v16 = vsel %vm562_vm0, %v874_v26, %v871_v6  ;;  %v875_v36 = vsel %vm562_vm0, %v873_v13, %v874_v26 }
 0x1d7   : > { %v879_v37 = vsel %vm1416_vm4, %v878_v16, 0.0  ;;  %v898_v38 = vadd.f32 %v875_v36, %v819_v31  ;;  %v915_v48 = vadd.f32 %v911_v42, %v1288_v20 }
 0x1d8   : > { %v895_v39 = vadd.f32 %v879_v37, %v805_v63  ;;  %v912_v44 = vadd.f32 %v1040_v33, %v901_v35 }
 0x1d9   : > { %v902_v43 = vadd.f32 %v898_v38, %v894_v40  ;;  %v919_v50 = vmax.f32 %v915_v48, 0.0 }
 0x1da   : > { %v899_v45 = vadd.f32 %v895_v39, %v889_v41  ;;  %v916_v49 = vadd.f32 %v912_v44, %v1310_v28 }
 0x1db   : > { %v913_v46 = vadd.f32 %v1040_v33, %v902_v43  ;;  %923 = vst [vmem:[%s226_s13 + $0x8] sm:$0xff] %v919_v50 }
 0x1dc   : > { %v910_v47 = vadd.f32 %v1040_v33, %v899_v45  ;;  %v920_v51 = vmax.f32 %v916_v49, 0.0 }
 0x1dd   : > { %v917_v56 = vadd.f32 %v913_v46, %v1312_v29 }
 0x1de   : > { %v914_v32 = vadd.f32 %v910_v47, %v1283_v18  ;;  %924 = vst [vmem:[%s226_s13 + $0x10] sm:$0xff] %v920_v51 }
 0x1df   : > { %v921_v52 = vmax.f32 %v917_v56, 0.0 }
 0x1e0   : > { %v918_v34 = vmax.f32 %v914_v32, 0.0 }
 0x1e1   : > { %925 = vst [vmem:[%s226_s13 + $0x18] sm:$0xff] %v921_v52 }
 0x1e2   : > { %922 = vst [vmem:[%s226_s13] sm:$0xff] %v918_v34 }
 0x1e3 PF: > { %s15_s18 = sadd.s32 1, %s1182_s18  }
 0x1e4   : > { %p12_p4 = scmp.ge.s32.totalorder %s15_s18, 4  }
 0x1e6   :  { %14 = sbr.rel (!%p12_p4) target bundleno = 1 (0x1), region = 70 }

</bundles_post_ra>
